<compile_context>
chip_gen: v7x
topology: tpu7x:2x2x1
jax: 0.10.0
libtpu: 0.0.40
codegen_flags: <defaults>
</compile_context>

<pallas_src>
import jax
import jax.numpy as jnp
from jax.experimental import pallas as pl
from jax.experimental.pallas import tpu as pltpu

LANE = 128
SUBLANE = 8
NOISE_DIM = 100
HIDDEN = 256


def _round_up(v, m):
    return -(-v // m) * m


def _generator_kernel(x_ref, w1_ref, b1_ref, w2_ref, b2_ref, w3_ref, b3_ref, o_ref):
    wdtype = w2_ref.dtype
    # Layer 1: Linear(100 -> 256) + ReLU (f32 accumulation on MXU, ragged K handled by Mosaic)
    h1 = jnp.dot(x_ref[...], w1_ref[...], preferred_element_type=jnp.float32)
    h1 = jnp.maximum(h1 + b1_ref[...], 0.0).astype(wdtype)
    # Layer 2: Linear(256 -> 256) + ReLU
    h2 = jnp.dot(h1, w2_ref[...], preferred_element_type=jnp.float32)
    h2 = jnp.maximum(h2 + b2_ref[...], 0.0).astype(wdtype)
    # Layer 3: Linear(256 -> out_pad) + Tanh (bias add / tanh in f32)
    h3 = jnp.dot(h2, w3_ref[...], preferred_element_type=jnp.float32)
    o_ref[...] = jnp.tanh(h3 + b3_ref[...])


def prepare_generator_params(params, compute_dtype=jnp.bfloat16):
    """One-time pad/cast of weights & biases (hoisted out of the per-call hot path).

    params: w1 (100,256), b1 (1,256) or (256,), w2 (256,256), b2, w3 (256,INUNITS), b3
    Returns (prepared_arrays_dict, meta_dict).
    """
    w1, b1 = params["w1"], params["b1"]
    w2, b2 = params["w2"], params["b2"]
    w3, b3 = params["w3"], params["b3"]
    in_dim, hidden = w1.shape
    inunits = w3.shape[1]
    out_pad = _round_up(inunits, LANE)   # lane-dense output slab (unmasked vst)

    prep = {
        "w1": jnp.asarray(w1, compute_dtype),                         # (100, 256) — no K pad
        "b1": jnp.asarray(b1, jnp.float32).reshape(1, hidden),
        "w2": jnp.asarray(w2, compute_dtype),
        "b2": jnp.asarray(b2, jnp.float32).reshape(1, hidden),
        "w3": jnp.pad(jnp.asarray(w3, compute_dtype), ((0, 0), (0, out_pad - inunits))),
        "b3": jnp.pad(jnp.asarray(b3, jnp.float32).reshape(1, inunits),
                      ((0, 0), (0, out_pad - inunits))),
    }
    meta = {"in_dim": int(in_dim), "hidden": int(hidden), "inunits": int(inunits),
            "out_pad": int(out_pad), "compute_dtype": compute_dtype}
    return prep, meta


def generator_forward(x, prep, meta, *, block_b=None, unpad=True):
    """Fused 3-layer MLP generator forward.

    x:    (B, 100) float32 noise.
    prep: output of prepare_generator_params (weights resident in VMEM inside the kernel).
    """
    B, in_dim = x.shape
    assert in_dim == meta["in_dim"], f"expected noise dim {meta['in_dim']}, got {in_dim}"
    compute_dtype = meta["compute_dtype"]
    out_pad = meta["out_pad"]
    inunits = meta["inunits"]

    # Batch tiling: single tile for small B; otherwise an even number of <=2048-row
    # tiles (keeps v7x's two TensorCores balanced, keeps step count low on v5e/v6e).
    if block_b is None:
        n_tiles = 1 if B <= 256 else 2 * pl.cdiv(B, 2 * 2048)
        block_b = _round_up(pl.cdiv(B, n_tiles), SUBLANE)
    block_b = max(SUBLANE, _round_up(min(int(block_b), _round_up(B, SUBLANE)), SUBLANE))
    n_tiles = pl.cdiv(B, block_b)
    b_pad = n_tiles * block_b

    # Per-call prep on x only: dtype cast (+ batch pad only if the batch is ragged).
    x_p = x.astype(compute_dtype)
    if b_pad != B:
        x_p = jnp.pad(x_p, ((0, b_pad - B), (0, 0)))

    # Replicated (constant block index) specs: fetched once, resident across the grid.
    rep = lambda arr: pl.BlockSpec(arr.shape, lambda i: (0, 0))

    cbytes = jnp.dtype(compute_dtype).itemsize
    n_wparams = in_dim * HIDDEN + HIDDEN * HIDDEN + HIDDEN * out_pad
    flops = 2 * b_pad * n_wparams
    bytes_accessed = (b_pad * in_dim * cbytes            # x
                      + n_wparams * cbytes                # weights
                      + (2 * HIDDEN + out_pad) * 4        # biases
                      + b_pad * out_pad * 4)              # output
    cost = pl.CostEstimate(flops=flops, transcendentals=b_pad * out_pad,
                           bytes_accessed=bytes_accessed)

    # Explicit VMEM bound (v7x physical VMEM is 64 MiB, scoped default 32 MiB):
    # double-buffered x/out tiles + resident weights + f32 intermediates, with headroom.
    vmem_est = (2 * block_b * in_dim * cbytes
                + 2 * block_b * out_pad * 4
                + 2 * n_wparams * cbytes
                + 2 * (2 * HIDDEN + out_pad) * 4
                + 4 * block_b * HIDDEN * 4)
    vmem_limit = int(min(max(2 * vmem_est, 16 << 20), 48 << 20))

    out = pl.pallas_call(
        _generator_kernel,
        out_shape=jax.ShapeDtypeStruct((b_pad, out_pad), jnp.float32),
        grid_spec=pltpu.PrefetchScalarGridSpec(
            num_scalar_prefetch=0,
            grid=(n_tiles,),
            in_specs=[
                pl.BlockSpec((block_b, in_dim), lambda i: (i, 0)),   # x tile (ragged K=100)
                rep(prep["w1"]), rep(prep["b1"]),
                rep(prep["w2"]), rep(prep["b2"]),
                rep(prep["w3"]), rep(prep["b3"]),
            ],
            out_specs=pl.BlockSpec((block_b, out_pad), lambda i: (i, 0)),
        ),
        compiler_params=pltpu.CompilerParams(
            dimension_semantics=("parallel",),   # batch tiles shard across v7x's 2 TCs
            vmem_limit_bytes=vmem_limit,
        ),
        cost_estimate=cost,
    )(x_p, prep["w1"], prep["b1"], prep["w2"], prep["b2"], prep["w3"], prep["b3"])

    if unpad and (b_pad != B or out_pad != inunits):
        out = out[:B, :inunits]
    return out


def init_generator_params(key, inunits):
    """Deterministic init mimicking PyTorch nn.Linear default (U[-1/sqrt(fan_in), +1/sqrt(fan_in)])."""
    k1, k2, k3, k4, k5, k6 = jax.random.split(key, 6)

    def lin(kw, kb, fan_in, fan_out):
        bound = 1.0 / jnp.sqrt(jnp.float32(fan_in))
        w = jax.random.uniform(kw, (fan_in, fan_out), jnp.float32, -bound, bound)
        b = jax.random.uniform(kb, (1, fan_out), jnp.float32, -bound, bound)
        return w, b

    w1, b1 = lin(k1, k2, NOISE_DIM, HIDDEN)
    w2, b2 = lin(k3, k4, HIDDEN, HIDDEN)
    w3, b3 = lin(k5, k6, HIDDEN, inunits)
    return {"w1": w1, "b1": b1, "w2": w2, "b2": b2, "w3": w3, "b3": b3}


def generator_reference(x, p):
    h1 = jnp.maximum(x @ p["w1"] + p["b1"], 0.0)
    h2 = jnp.maximum(h1 @ p["w2"] + p["b2"], 0.0)
    return jnp.tanh(h2 @ p["w3"] + p["b3"])


if __name__ == "__main__":
    key = jax.random.PRNGKey(0)
    kx, kp = jax.random.split(key)

    INUNITS = 64   # the module's constructor arg (generator output width)
    params = init_generator_params(kp, INUNITS)

    # 1) Small batch, f32 operand path (exact semantics), single tile, tight tolerance.
    prep_f32, meta_f32 = prepare_generator_params(params, compute_dtype=jnp.float32)
    x = jax.random.normal(kx, (8, NOISE_DIM), dtype=jnp.float32)  # noise vector z
    out = jax.block_until_ready(generator_forward(x, prep_f32, meta_f32))
    ref = generator_reference(x, params)
    assert out.shape == (8, INUNITS)
    assert jnp.allclose(out, ref, atol=1e-5, rtol=1e-5)

    # 2) Larger ragged batch, default bf16-operand path (f32 accumulation), multi-step
    #    grid (exercises pipelining / megacore sharding + batch padding), looser tol.
    prep_bf16, meta_bf16 = prepare_generator_params(params)   # bf16 default
    xb = jax.random.normal(kx, (300, NOISE_DIM), dtype=jnp.float32)
    out_b = jax.block_until_ready(generator_forward(xb, prep_bf16, meta_bf16, block_b=128))
    ref_b = generator_reference(xb, params)
    assert out_b.shape == (300, INUNITS)
    assert float(jnp.max(jnp.abs(out_b - ref_b))) < 5e-2

    print("KERNEL_OK")
</pallas_src>

<mosaic_0001>
module attributes {stable_mosaic.version = 11 : i64} {
  func.func @_generator_kernel(%arg0: i32, %arg1: memref<8x100xf32, #tpu.memory_space<vmem>>, %arg2: memref<100x256xf32, #tpu.memory_space<vmem>>, %arg3: memref<1x256xf32, #tpu.memory_space<vmem>>, %arg4: memref<256x256xf32, #tpu.memory_space<vmem>>, %arg5: memref<1x256xf32, #tpu.memory_space<vmem>>, %arg6: memref<256x128xf32, #tpu.memory_space<vmem>>, %arg7: memref<1x128xf32, #tpu.memory_space<vmem>>, %arg8: memref<8x128xf32, #tpu.memory_space<vmem>>) attributes {dimension_semantics = [#tpu.dimension_semantics<parallel>], iteration_bounds = array<i64: 1>, scalar_prefetch = 0 : i64, scratch_operands = 0 : i64, tpu.core_type = #tpu.core_type<tc>, window_params = [{transform_indices = @transform_0, window_bounds = array<i64: 8, 100>}, {pipeline_mode = #tpu.pipeline_mode<synchronous>, transform_indices = @transform_1, window_bounds = array<i64: 100, 256>}, {pipeline_mode = #tpu.pipeline_mode<synchronous>, transform_indices = @transform_2, window_bounds = array<i64: 1, 256>}, {pipeline_mode = #tpu.pipeline_mode<synchronous>, transform_indices = @transform_3, window_bounds = array<i64: 256, 256>}, {pipeline_mode = #tpu.pipeline_mode<synchronous>, transform_indices = @transform_4, window_bounds = array<i64: 1, 256>}, {pipeline_mode = #tpu.pipeline_mode<synchronous>, transform_indices = @transform_5, window_bounds = array<i64: 256, 128>}, {pipeline_mode = #tpu.pipeline_mode<synchronous>, transform_indices = @transform_6, window_bounds = array<i64: 1, 128>}, {transform_indices = @transform_7, window_bounds = array<i64: 8, 128>}]} {
    %c0 = arith.constant 0 : index
    %c0_0 = arith.constant 0 : index
    %0 = vector.load %arg1[%c0, %c0_0] : memref<8x100xf32, #tpu.memory_space<vmem>>, vector<8x100xf32>
    %c0_1 = arith.constant 0 : index
    %c0_2 = arith.constant 0 : index
    %1 = vector.load %arg2[%c0_1, %c0_2] : memref<100x256xf32, #tpu.memory_space<vmem>>, vector<100x256xf32>
    %cst = arith.constant dense<0.000000e+00> : vector<8x256xf32>
    %2 = tpu.matmul %0, %1, %cst {dimension_numbers = #tpu.dot_dimension_numbers<[1], [0], [0], [1], [0, 0, 1, 1], [], []>} : vector<8x100xf32>, vector<100x256xf32>, vector<8x256xf32> -> vector<8x256xf32>
    %c0_3 = arith.constant 0 : index
    %c0_4 = arith.constant 0 : index
    %3 = vector.load %arg3[%c0_3, %c0_4] : memref<1x256xf32, #tpu.memory_space<vmem>>, vector<1x256xf32>
    %4 = vector.broadcast %3 : vector<1x256xf32> to vector<8x256xf32>
    %5 = arith.addf %2, %4 : vector<8x256xf32>
    %cst_5 = arith.constant 0.000000e+00 : f32
    %6 = vector.broadcast %cst_5 : f32 to vector<8x256xf32>
    %7 = arith.maximumf %5, %6 : vector<8x256xf32>
    %c0_6 = arith.constant 0 : index
    %c0_7 = arith.constant 0 : index
    %8 = vector.load %arg4[%c0_6, %c0_7] : memref<256x256xf32, #tpu.memory_space<vmem>>, vector<256x256xf32>
    %cst_8 = arith.constant dense<0.000000e+00> : vector<8x256xf32>
    %9 = tpu.matmul %7, %8, %cst_8 {dimension_numbers = #tpu.dot_dimension_numbers<[1], [0], [0], [1], [0, 0, 1, 1], [], []>} : vector<8x256xf32>, vector<256x256xf32>, vector<8x256xf32> -> vector<8x256xf32>
    %c0_9 = arith.constant 0 : index
    %c0_10 = arith.constant 0 : index
    %10 = vector.load %arg5[%c0_9, %c0_10] : memref<1x256xf32, #tpu.memory_space<vmem>>, vector<1x256xf32>
    %11 = vector.broadcast %10 : vector<1x256xf32> to vector<8x256xf32>
    %12 = arith.addf %9, %11 : vector<8x256xf32>
    %cst_11 = arith.constant 0.000000e+00 : f32
    %13 = vector.broadcast %cst_11 : f32 to vector<8x256xf32>
    %14 = arith.maximumf %12, %13 : vector<8x256xf32>
    %c0_12 = arith.constant 0 : index
    %c0_13 = arith.constant 0 : index
    %15 = vector.load %arg6[%c0_12, %c0_13] : memref<256x128xf32, #tpu.memory_space<vmem>>, vector<256x128xf32>
    %cst_14 = arith.constant dense<0.000000e+00> : vector<8x128xf32>
    %16 = tpu.matmul %14, %15, %cst_14 {dimension_numbers = #tpu.dot_dimension_numbers<[1], [0], [0], [1], [0, 0, 1, 1], [], []>} : vector<8x256xf32>, vector<256x128xf32>, vector<8x128xf32> -> vector<8x128xf32>
    %c0_15 = arith.constant 0 : index
    %c0_16 = arith.constant 0 : index
    %17 = vector.load %arg7[%c0_15, %c0_16] : memref<1x128xf32, #tpu.memory_space<vmem>>, vector<1x128xf32>
    %18 = vector.broadcast %17 : vector<1x128xf32> to vector<8x128xf32>
    %19 = arith.addf %16, %18 : vector<8x128xf32>
    %20 = math.tanh %19 : vector<8x128xf32>
    %c0_17 = arith.constant 0 : index
    %c0_18 = arith.constant 0 : index
    %21 = vector.load %arg8[%c0_17, %c0_18] : memref<8x128xf32, #tpu.memory_space<vmem>>, vector<8x128xf32>
    tpu.vector_store %arg8[%c0_17, %c0_18], %20 {strides = array<i32>} : memref<8x128xf32, #tpu.memory_space<vmem>>, vector<8x128xf32>,
    return
  }
  func.func @transform_0(%arg0: i32) -> (i32, i32) {
    %c0_i32 = arith.constant 0 : i32
    %c0_i32_0 = arith.constant 0 : i32
    return %arg0, %c0_i32 : i32, i32
  }
  func.func @transform_1(%arg0: i32) -> (i32, i32) {
    %c0_i32 = arith.constant 0 : i32
    %c0_i32_0 = arith.constant 0 : i32
    %c0_i32_1 = arith.constant 0 : i32
    return %c0_i32, %c0_i32_0 : i32, i32
  }
  func.func @transform_2(%arg0: i32) -> (i32, i32) {
    %c0_i32 = arith.constant 0 : i32
    %c0_i32_0 = arith.constant 0 : i32
    %c0_i32_1 = arith.constant 0 : i32
    return %c0_i32, %c0_i32_0 : i32, i32
  }
  func.func @transform_3(%arg0: i32) -> (i32, i32) {
    %c0_i32 = arith.constant 0 : i32
    %c0_i32_0 = arith.constant 0 : i32
    %c0_i32_1 = arith.constant 0 : i32
    return %c0_i32, %c0_i32_0 : i32, i32
  }
  func.func @transform_4(%arg0: i32) -> (i32, i32) {
    %c0_i32 = arith.constant 0 : i32
    %c0_i32_0 = arith.constant 0 : i32
    %c0_i32_1 = arith.constant 0 : i32
    return %c0_i32, %c0_i32_0 : i32, i32
  }
  func.func @transform_5(%arg0: i32) -> (i32, i32) {
    %c0_i32 = arith.constant 0 : i32
    %c0_i32_0 = arith.constant 0 : i32
    %c0_i32_1 = arith.constant 0 : i32
    return %c0_i32, %c0_i32_0 : i32, i32
  }
  func.func @transform_6(%arg0: i32) -> (i32, i32) {
    %c0_i32 = arith.constant 0 : i32
    %c0_i32_0 = arith.constant 0 : i32
    %c0_i32_1 = arith.constant 0 : i32
    return %c0_i32, %c0_i32_0 : i32, i32
  }
  func.func @transform_7(%arg0: i32) -> (i32, i32) {
    %c0_i32 = arith.constant 0 : i32
    %c0_i32_0 = arith.constant 0 : i32
    return %arg0, %c0_i32 : i32, i32
  }
}

</mosaic_0001>

<bundles_post_ra>
// kernel: tpu_custom_call.1
= control target key start
LH: loop header
LB: loop body
LE: loop exit
PB: predicated region body
PF: predicated region fallthrough
CT: control target
= control target key end

     0   :  { %12 = vsyncpa [#allocation3], 0  ;;  %s896_s0 = inlined_call_operand.hbm [shape: f32[8,100], index: 0, kind: input, shape index: {}]   ;;  %s897_s1 = inlined_call_operand.hbm [shape: f32[100,256], index: 1, kind: input, shape index: {}]   ;;  %s898_s2 = inlined_call_operand.vmem [shape: f32[1,256], index: 2, kind: input, shape index: {}]   ;;  %s899_s3 = inlined_call_operand.hbm [shape: f32[256,256], index: 3, kind: input, shape index: {}]   ;;  %s900_s4 = inlined_call_operand.vmem [shape: f32[1,256], index: 4, kind: input, shape index: {}]   ;;  %s901_s5 = inlined_call_operand.hbm [shape: f32[256,128], index: 5, kind: input, shape index: {}]   ;;  %s902_s6 = inlined_call_operand.vmem [shape: f32[1,128], index: 6, kind: input, shape index: {}]   ;;  %s903_s7 = inlined_call_operand.hbm [shape: f32[8,128], index: 7, kind: output, shape index: {}]  }
   0x1   :  { %13 = vsyncpa [#allocation6], 0 }
   0x2   :  { %14 = vsyncpa [#allocation9], 0 }
   0x3   :  { %15 = vsyncpa [#allocation4], 0  ;;  %s769_s24 = smov [#allocation5]   ;;  %s651_s28 = scalar_lea.hbm %s897_s1, 3328 }
   0x4   :  { %s31_s25 = sshll.u32 %s769_s24, 4  ;;  %p652_p0 = scmp.ne.s32.totalorder %s897_s1, %s651_s28  ;;  %s32_s25 = int_to_ptr.vmem [resolvable:$true] %s31_s25 }
   0x5   :  { %p655_p1 = scmp.lt.u32.totalorder %s651_s28, %s897_s1 }
   0x7   :  { %p657_p2 = pnand %p655_p1, %p652_p0 }
   0x9   :  { %660 = shalt.err (!%p657_p2)
}
   0xa   :  { %s661_s10 = scalar_lea.vmem %s32_s25, 3328  ;;  %p666_p4 = scmp.lt.s32.totalorder %s32_s25, %s32_s25 }
   0xb   :  { %p662_p3 = scmp.ne.s32.totalorder %s32_s25, %s661_s10  ;;  %p667_p5 = scmp.lt.s32.totalorder %s661_s10, %s661_s10 }
   0xd   :  { %p668_p6 = por %p667_p5, %p666_p4 }
   0xf   :  { %p669_p7 = pnand %p668_p6, %p662_p3 }
  0x11   :  { %672 = shalt.err (!%p669_p7)
}
  0x12   :  { %s770_s11 = smov 256   ;;  %s771_s12 = smov 16  }
  0x13   :  { %37 = dma.hbm_to_vmem [thread:$0]  %s897_s1, 3328, %s32_s25, [#allocation6], %s770_s11, %s770_s11, %s771_s12  }
  0x14   :  { %s772_s15 = smov [#allocation2]   ;;  %s773_s17 = smov [#allocation7]  }
  0x15   :  { %s22_s16 = sshll.u32 %s772_s15, 4  ;;  %s45_s18 = sshll.u32 %s773_s17, 4  ;;  %s23_s16 = int_to_ptr.vmem [resolvable:$true] %s22_s16  ;;  %s46_s18 = int_to_ptr.vmem [resolvable:$true] %s45_s18 }
  0x16   :  { %s673_s21 = scalar_lea.hbm %s896_s0, 128 }
  0x17   :  { %p674_p8 = scmp.ne.s32.totalorder %s896_s0, %s673_s21  ;;  %p677_p9 = scmp.lt.u32.totalorder %s673_s21, %s896_s0 }
  0x19   :  { %p679_p10 = pnand %p677_p9, %p674_p8 }
  0x1b   :  { %682 = shalt.err (!%p679_p10)
}
  0x1c   :  { %s683_s1 = scalar_lea.vmem %s23_s16, 128  ;;  %p688_p12 = scmp.lt.s32.totalorder %s23_s16, %s23_s16 }
  0x1d   :  { %p684_p11 = scmp.ne.s32.totalorder %s23_s16, %s683_s1  ;;  %p689_p13 = scmp.lt.s32.totalorder %s683_s1, %s683_s1 }
  0x1f   :  { %p690_p0 = por %p689_p13, %p688_p12 }
  0x21   :  { %p691_p1 = pnand %p690_p0, %p684_p11 }
  0x23   :  { %694 = shalt.err (!%p691_p1)
}
  0x24   :  { %25 = dma.hbm_to_vmem [thread:$0]  %s896_s0, 128, %s23_s16, [#allocation3]  }
  0x25   :  { %s695_s30 = scalar_lea.hbm %s899_s3, 8192 }
  0x26   :  { %p696_p2 = scmp.ne.s32.totalorder %s899_s3, %s695_s30  ;;  %p699_p3 = scmp.lt.u32.totalorder %s695_s30, %s899_s3 }
  0x28   :  { %p701_p4 = pnand %p699_p3, %p696_p2 }
  0x2a   :  { %704 = shalt.err (!%p701_p4)
}
  0x2b   :  { %s705_s14 = scalar_lea.vmem %s46_s18, 8192  ;;  %p710_p6 = scmp.lt.s32.totalorder %s46_s18, %s46_s18 }
  0x2c   :  { %p706_p5 = scmp.ne.s32.totalorder %s46_s18, %s705_s14  ;;  %p711_p7 = scmp.lt.s32.totalorder %s705_s14, %s705_s14 }
  0x2e   :  { %p712_p8 = por %p711_p7, %p710_p6 }
  0x30   :  { %p713_p9 = pnand %p712_p8, %p706_p5 }
  0x32   :  { %716 = shalt.err (!%p713_p9)
}
  0x33   :  { %51 = dma.hbm_to_vmem [thread:$0]  %s899_s3, 8192, %s46_s18, [#allocation6], %s770_s11, %s770_s11, %s771_s12  }
  0x34   :  { %s774_s16 = smov [#allocation8]   ;;  %s717_s21 = scalar_lea.hbm %s901_s5, 4096 }
  0x35   :  { %s59_s17 = sshll.u32 %s774_s16, 4  ;;  %p718_p10 = scmp.ne.s32.totalorder %s901_s5, %s717_s21  ;;  %s60_s17 = int_to_ptr.vmem [resolvable:$true] %s59_s17 }
  0x36   :  { %p721_p11 = scmp.lt.u32.totalorder %s717_s21, %s901_s5 }
  0x38   :  { %p723_p12 = pnand %p721_p11, %p718_p10 }
  0x3a   :  { %726 = shalt.err (!%p723_p12)
}
  0x3b   :  { %s727_s1 = scalar_lea.vmem %s60_s17, 4096  ;;  %p732_p0 = scmp.lt.s32.totalorder %s60_s17, %s60_s17 }
  0x3c   :  { %p728_p13 = scmp.ne.s32.totalorder %s60_s17, %s727_s1  ;;  %p733_p1 = scmp.lt.s32.totalorder %s727_s1, %s727_s1 }
  0x3e   :  { %p734_p2 = por %p733_p1, %p732_p0 }
  0x40   :  { %p735_p3 = pnand %p734_p2, %p728_p13 }
  0x42   :  { %738 = shalt.err (!%p735_p3)
}
  0x43   :  { %s775_s3 = smov 128   ;;  %s776_s11 = smov 8  }
  0x44   :  { %65 = dma.hbm_to_vmem [thread:$0]  %s901_s5, 4096, %s60_s17, [#allocation9], %s775_s3, %s775_s3, %s776_s11  }
  0x45   :  { %761 = dma.done.wait [#allocation3], 128  }
  0x46   :  { %762 = vsyncadd [#allocation3], 4294967168 }
  0x47   :  { %763 = dma.done.wait [#allocation6], 11520  }
  0x48   :  { %764 = vsyncadd [#allocation6], 4294955776 }
  0x49   :  { %765 = dma.done.wait [#allocation9], 4096  }
  0x4a   :  { %766 = vsyncadd [#allocation9], 4294963200  ;;  %v777_v0 = vmov 0.0   ;;  %v82_v1 = vld [vmem:[#allocation5 + $0x8] sm:$0xff]  ;;  %v84_v2 = vld [vmem:[#allocation5 + $0x18] sm:$0xff]  ;;  %vm123_vm0 = vcmask 1043456  }
  0x4b   :  { %194 = vmatprep.mubr.f32.mxu0 %v777_v0  ;;  %v81_v3 = vld [vmem:[#allocation5] sm:$0xff]  ;;  %v519_v4 = vpack.c.bf16 %v84_v2, %v82_v1  ;;  %v83_v5 = vld [vmem:[#allocation5 + $0x10] sm:$0xff]  ;;  %v86_v6 = vld [vmem:[#allocation5 + $0x28] sm:$0xff]  ;;  %vm119_vm1 = vcmask 818176  }
  0x4c   :  { %v88_v7 = vld [vmem:[#allocation5 + $0x38] sm:$0xff]  ;;  %v521_v8 = vpack.c.bf16 %v83_v5, %v81_v3  ;;  %v85_v10 = vld [vmem:[#allocation5 + $0x20] sm:$0xff]  ;;  %v87_v11 = vld [vmem:[#allocation5 + $0x30] sm:$0xff] }
  0x4d   :  { %v523_v9 = vpack.c.bf16 %v88_v7, %v86_v6  ;;  %v90_v12 = vld [vmem:[#allocation5 + $0x48] sm:$0xff]  ;;  %520 = vmatprep.subr.bf16.mxu0 %v519_v4  ;;  %v92_v13 = vld [vmem:[#allocation5 + $0x58] sm:$0xff]  ;;  %v525_v14 = vpack.c.bf16 %v87_v11, %v85_v10  ;;  %v89_v16 = vld [vmem:[#allocation5 + $0x40] sm:$0xff] }
  0x4e   :  { %522 = vmatpush1.bf16.msra.mxu0 %v521_v8  ;;  %v527_v15 = vpack.c.bf16 %v92_v13, %v90_v12  ;;  %v91_v17 = vld [vmem:[#allocation5 + $0x50] sm:$0xff]  ;;  %v94_v18 = vld [vmem:[#allocation5 + $0x68] sm:$0xff]  ;;  %v96_v19 = vld [vmem:[#allocation5 + $0x78] sm:$0xff] }
  0x4f   :  { %524 = vmatprep.subr.bf16.mxu0 %v523_v9  ;;  %v93_v20 = vld [vmem:[#allocation5 + $0x60] sm:$0xff]  ;;  %v529_v21 = vpack.c.bf16 %v91_v17, %v89_v16  ;;  %v95_v22 = vld [vmem:[#allocation5 + $0x70] sm:$0xff]  ;;  %v98_v23 = vld [vmem:[#allocation5 + $0x88] sm:$0xff]  ;;  %v531_v25 = vpack.c.bf16 %v96_v19, %v94_v18 }
  0x50   :  { %v100_v24 = vld [vmem:[#allocation5 + $0x98] sm:$0xff]  ;;  %v206_v27 = vld [vmem:[#allocation7 + $0x18] sm:$0xff]  ;;  %v203_v28 = vld [vmem:[#allocation7] sm:$0xff]  ;;  %v533_v38 = vpack.c.bf16 %v95_v22, %v93_v20 }
  0x51   :  { %v204_v26 = vld [vmem:[#allocation7 + $0x8] sm:$0xff]  ;;  %v205_v30 = vld [vmem:[#allocation7 + $0x10] sm:$0xff]  ;;  %v210_v32 = vld [vmem:[#allocation7 + $0x38] sm:$0xff]  ;;  %v535_v40 = vpack.c.bf16 %v100_v24, %v98_v23 }
  0x52   :  { %526 = vmatpush1.bf16.msra.mxu0 %v525_v14  ;;  %v543_v29 = vpack.c.bf16 %v206_v27, %v204_v26  ;;  %v208_v31 = vld [vmem:[#allocation7 + $0x28] sm:$0xff]  ;;  %v545_v33 = vpack.c.bf16 %v205_v30, %v203_v28  ;;  %v207_v35 = vld [vmem:[#allocation7 + $0x20] sm:$0xff]  ;;  %v209_v36 = vld [vmem:[#allocation7 + $0x30] sm:$0xff] }
  0x53   :  { %528 = vmatprep.subr.bf16.mxu0 %v527_v15  ;;  %v547_v34 = vpack.c.bf16 %v210_v32, %v208_v31  ;;  %v212_v37 = vld [vmem:[#allocation7 + $0x48] sm:$0xff]  ;;  %v214_v39 = vld [vmem:[#allocation7 + $0x58] sm:$0xff]  ;;  %v97_v41 = vld [vmem:[#allocation5 + $0x80] sm:$0xff]  ;;  %v549_v44 = vpack.c.bf16 %v209_v36, %v207_v35 }
  0x54   :  { %544 = vmatprep.subr.bf16.mxu1 %v543_v29  ;;  %v99_v42 = vld [vmem:[#allocation5 + $0x90] sm:$0xff]  ;;  %v102_v43 = vld [vmem:[#allocation5 + $0xa8] sm:$0xff]  ;;  %v104_v45 = vld [vmem:[#allocation5 + $0xb8] sm:$0xff]  ;;  %v551_v46 = vpack.c.bf16 %v214_v39, %v212_v37 }
  0x55   :  { %546 = vmatpush1.bf16.msra.mxu1 %v545_v33  ;;  %v211_v47 = vld [vmem:[#allocation7 + $0x40] sm:$0xff]  ;;  %v213_v48 = vld [vmem:[#allocation7 + $0x50] sm:$0xff]  ;;  %v216_v49 = vld [vmem:[#allocation7 + $0x68] sm:$0xff]  ;;  %v537_v51 = vpack.c.bf16 %v99_v42, %v97_v41  ;;  %v539_v52 = vpack.c.bf16 %v104_v45, %v102_v43 }
  0x56   :  { %530 = vmatpush1.bf16.msra.mxu0 %v529_v21  ;;  %548 = vmatprep.subr.bf16.mxu1 %v547_v34  ;;  %v218_v50 = vld [vmem:[#allocation7 + $0x78] sm:$0xff]  ;;  %v101_v53 = vld [vmem:[#allocation5 + $0xa0] sm:$0xff]  ;;  %v103_v54 = vld [vmem:[#allocation5 + $0xb0] sm:$0xff]  ;;  %v553_v55 = vpack.c.bf16 %v213_v48, %v211_v47 }
  0x57   :  { %532 = vmatprep.subr.bf16.mxu0 %v531_v25  ;;  %v555_v56 = vpack.c.bf16 %v218_v50, %v216_v49  ;;  %v215_v57 = vld [vmem:[#allocation7 + $0x60] sm:$0xff]  ;;  %v217_v58 = vld [vmem:[#allocation7 + $0x70] sm:$0xff]  ;;  %v220_v59 = vld [vmem:[#allocation7 + $0x88] sm:$0xff]  ;;  %v541_v61 = vpack.c.bf16 %v103_v54, %v101_v53 }
  0x58   :  { %v222_v60 = vld [vmem:[#allocation7 + $0x98] sm:$0xff]  ;;  %v557_v62 = vpack.c.bf16 %v217_v58, %v215_v57  ;;  %v219_v1 = vld [vmem:[#allocation7 + $0x80] sm:$0xff]  ;;  %v221_v2 = vld [vmem:[#allocation7 + $0x90] sm:$0xff] }
  0x59   :  { %550 = vmatpush1.bf16.msra.mxu1 %v549_v44  ;;  %v106_v63 = vld [vmem:[#allocation5 + $0xc8] sm:$0xf]  ;;  %v559_v0 = vpack.c.bf16 %v222_v60, %v220_v59  ;;  %v224_v3 = vld [vmem:[#allocation7 + $0xa8] sm:$0xff]  ;;  %v105_v5 = vld [vmem:[#allocation5 + $0xc0] sm:$0xf]  ;;  %v561_v6 = vpack.c.bf16 %v221_v2, %v219_v1 }
  0x5a   :  { %534 = vmatpush1.bf16.msra.mxu0 %v533_v38  ;;  %552 = vmatprep.subr.bf16.mxu1 %v551_v46  ;;  %v226_v4 = vld [vmem:[#allocation7 + $0xb8] sm:$0xff]  ;;  %v80_v7 = vld [vmem:[#allocation2] sm:$0xff]  ;;  %v223_v9 = vld [vmem:[#allocation7 + $0xa0] sm:$0xff] }
  0x5b   :  { %536 = vmatprep.subr.bf16.mxu0 %v535_v40  ;;  %v563_v8 = vpack.c.bf16 %v226_v4, %v224_v3  ;;  %v225_v10 = vld [vmem:[#allocation7 + $0xb0] sm:$0xff]  ;;  %v228_v11 = vld [vmem:[#allocation7 + $0xc8] sm:$0xff]  ;;  %v230_v12 = vld [vmem:[#allocation7 + $0xd8] sm:$0xff] }
  0x5c   :  { %v565_v13 = vpack.c.bf16 %v225_v10, %v223_v9  ;;  %v567_v14 = vpack.c.bf16 %v230_v12, %v228_v11  ;;  %v227_v15 = vld [vmem:[#allocation7 + $0xc0] sm:$0xff]  ;;  %v229_v16 = vld [vmem:[#allocation7 + $0xd0] sm:$0xff]  ;;  %v232_v17 = vld [vmem:[#allocation7 + $0xe8] sm:$0xff] }
  0x5d   :  { %554 = vmatpush1.bf16.msra.mxu1 %v553_v55  ;;  %v234_v18 = vld [vmem:[#allocation7 + $0xf8] sm:$0xff]  ;;  %v569_v19 = vpack.c.bf16 %v229_v16, %v227_v15  ;;  %v231_v21 = vld [vmem:[#allocation7 + $0xe0] sm:$0xff]  ;;  %v233_v22 = vld [vmem:[#allocation7 + $0xf0] sm:$0xff] }
  0x5e   :  { %538 = vmatpush1.bf16.msra.mxu0 %v537_v51  ;;  %556 = vmatprep.subr.bf16.mxu1 %v555_v56  ;;  %v571_v20 = vpack.c.bf16 %v234_v18, %v232_v17  ;;  %v236_v23 = vld [vmem:[#allocation7 + $0x108] sm:$0xff]  ;;  %v238_v24 = vld [vmem:[#allocation7 + $0x118] sm:$0xff]  ;;  %v573_v25 = vpack.c.bf16 %v233_v22, %v231_v21  ;;  %v235_v27 = vld [vmem:[#allocation7 + $0x100] sm:$0xff] }
  0x5f   :  { %540 = vmatprep.subr.bf16.mxu0 %v539_v52  ;;  %v575_v26 = vpack.c.bf16 %v238_v24, %v236_v23  ;;  %v237_v28 = vld [vmem:[#allocation7 + $0x110] sm:$0xff]  ;;  %v240_v29 = vld [vmem:[#allocation7 + $0x128] sm:$0xff]  ;;  %v242_v30 = vld [vmem:[#allocation7 + $0x138] sm:$0xff] }
  0x60   :  { %v577_v31 = vpack.c.bf16 %v237_v28, %v235_v27  ;;  %v579_v32 = vpack.c.bf16 %v242_v30, %v240_v29  ;;  %v239_v33 = vld [vmem:[#allocation7 + $0x120] sm:$0xff]  ;;  %v241_v34 = vld [vmem:[#allocation7 + $0x130] sm:$0xff]  ;;  %v244_v35 = vld [vmem:[#allocation7 + $0x148] sm:$0xff] }
  0x61   :  { %558 = vmatpush1.bf16.msra.mxu1 %v557_v62  ;;  %v246_v36 = vld [vmem:[#allocation7 + $0x158] sm:$0xff]  ;;  %v581_v37 = vpack.c.bf16 %v241_v34, %v239_v33  ;;  %v243_v39 = vld [vmem:[#allocation7 + $0x140] sm:$0xff]  ;;  %v245_v40 = vld [vmem:[#allocation7 + $0x150] sm:$0xff] }
  0x62   :  { %542 = vmatpush1.bf16.msra.mxu0 %v541_v61  ;;  %560 = vmatprep.subr.bf16.mxu1 %v559_v0  ;;  %v583_v38 = vpack.c.bf16 %v246_v36, %v244_v35  ;;  %v248_v41 = vld [vmem:[#allocation7 + $0x168] sm:$0xff]  ;;  %v250_v42 = vld [vmem:[#allocation7 + $0x178] sm:$0xff]  ;;  %v585_v43 = vpack.c.bf16 %v245_v40, %v243_v39  ;;  %v247_v45 = vld [vmem:[#allocation7 + $0x160] sm:$0xff] }
  0x63   :  { %480 = vmatprep.subr.msk.mxu0 %vm123_vm0, %v106_v63  ;;  %v587_v44 = vpack.c.bf16 %v250_v42, %v248_v41  ;;  %v249_v46 = vld [vmem:[#allocation7 + $0x170] sm:$0xff]  ;;  %v252_v47 = vld [vmem:[#allocation7 + $0x188] sm:$0xff]  ;;  %v254_v48 = vld [vmem:[#allocation7 + $0x198] sm:$0xff] }
  0x64   :  { %v589_v49 = vpack.c.bf16 %v249_v46, %v247_v45  ;;  %v591_v50 = vpack.c.bf16 %v254_v48, %v252_v47  ;;  %v251_v51 = vld [vmem:[#allocation7 + $0x180] sm:$0xff]  ;;  %v253_v52 = vld [vmem:[#allocation7 + $0x190] sm:$0xff]  ;;  %v256_v53 = vld [vmem:[#allocation7 + $0x1a8] sm:$0xff]  ;;  %v109_v47 = vlaneseq }
  0x65   :  { %562 = vmatpush1.bf16.msra.mxu1 %v561_v6  ;;  %v258_v54 = vld [vmem:[#allocation7 + $0x1b8] sm:$0xff]  ;;  %v593_v55 = vpack.c.bf16 %v253_v52, %v251_v51  ;;  %v255_v57 = vld [vmem:[#allocation7 + $0x1a0] sm:$0xff]  ;;  %v257_v58 = vld [vmem:[#allocation7 + $0x1b0] sm:$0xff] }
  0x66   :  { %481 = vmatpush1.msk.msra.mxu0 %vm123_vm0, %v105_v5  ;;  %564 = vmatprep.subr.bf16.mxu1 %v563_v8  ;;  %v595_v56 = vpack.c.bf16 %v258_v54, %v256_v53  ;;  %v260_v59 = vld [vmem:[#allocation7 + $0x1c8] sm:$0xff]  ;;  %v262_v60 = vld [vmem:[#allocation7 + $0x1d8] sm:$0xff]  ;;  %v597_v61 = vpack.c.bf16 %v257_v58, %v255_v57  ;;  %v259_v63 = vld [vmem:[#allocation7 + $0x1c0] sm:$0xff]  ;;  %v110_v48 = vshrl.u32 %v109_v47, 7 }
  0x67   :  { %482 = vmatmul.mubr.msk.f32.vlgmr.msra.gmra.mrb[0].mxu0 %vm119_vm1, %v80_v7  ;;  %v599_v62 = vpack.c.bf16 %v262_v60, %v260_v59  ;;  %v261_v0 = vld [vmem:[#allocation7 + $0x1d0] sm:$0xff]  ;;  %v264_v2 = vld [vmem:[#allocation7 + $0x1e8] sm:$0xff]  ;;  %v266_v3 = vld [vmem:[#allocation7 + $0x1f8] sm:$0xff] }
  0x68   :  { %v601_v1 = vpack.c.bf16 %v261_v0, %v259_v63  ;;  %v603_v4 = vpack.c.bf16 %v266_v3, %v264_v2  ;;  %v263_v5 = vld [vmem:[#allocation7 + $0x1e0] sm:$0xff]  ;;  %v265_v6 = vld [vmem:[#allocation7 + $0x1f0] sm:$0xff]  ;;  %v369_v9 = vld [vmem:[#allocation8 + $0x88] sm:$0xff]  ;;  %v115_v51 = vsub.s32 1, %v110_v48 }
  0x69   :  { %566 = vmatpush1.bf16.msra.mxu1 %v565_v13  ;;  %v605_v7 = vpack.c.bf16 %v265_v6, %v263_v5  ;;  %v368_v8 = vld [vmem:[#allocation8 + $0x80] sm:$0xff]  ;;  %v353_v12 = vld [vmem:[#allocation8 + $0x8] sm:$0xff]  ;;  %v370_v13 = vld [vmem:[#allocation8 + $0x90] sm:$0xff] }
  0x6a   :  { %568 = vmatprep.subr.bf16.mxu1 %v567_v14  ;;  %v352_v10 = vld [vmem:[#allocation8] sm:$0xff]  ;;  %v607_v11 = vpack.c.bf16 %v369_v9, %v368_v8  ;;  %v371_v14 = vld [vmem:[#allocation8 + $0x98] sm:$0xff]  ;;  %v354_v17 = vld [vmem:[#allocation8 + $0x10] sm:$0xff] }
  0x6b   :  { %v609_v15 = vpack.c.bf16 %v353_v12, %v352_v10  ;;  %v611_v16 = vpack.c.bf16 %v371_v14, %v370_v13  ;;  %v355_v18 = vld [vmem:[#allocation8 + $0x18] sm:$0xff]  ;;  %v356_v23 = vld [vmem:[#allocation8 + $0x20] sm:$0xff]  ;;  %v357_v24 = vld [vmem:[#allocation8 + $0x28] sm:$0xff] }
  0x6c   :  { %608 = vmatprep.subr.bf16.mxu0 %v607_v11  ;;  %v613_v21 = vpack.c.bf16 %v355_v18, %v354_v17  ;;  %v617_v27 = vpack.c.bf16 %v357_v24, %v356_v23  ;;  %v358_v29 = vld [vmem:[#allocation8 + $0x30] sm:$0xff]  ;;  %v359_v30 = vld [vmem:[#allocation8 + $0x38] sm:$0xff]  ;;  %v360_v35 = vld [vmem:[#allocation8 + $0x40] sm:$0xff] }
  0x6d   :  { %570 = vmatpush1.bf16.msra.mxu1 %v569_v19  ;;  %v372_v19 = vld [vmem:[#allocation8 + $0xa0] sm:$0xff]  ;;  %610 = vmatpush3.bf16.msra.mxu0 %v609_v15  ;;  %v621_v33 = vpack.c.bf16 %v359_v30, %v358_v29  ;;  %v361_v36 = vld [vmem:[#allocation8 + $0x48] sm:$0xff]  ;;  %v362_v41 = vld [vmem:[#allocation8 + $0x50] sm:$0xff] }
  0x6e   :  { %572 = vmatprep.subr.bf16.mxu1 %v571_v20  ;;  %v373_v20 = vld [vmem:[#allocation8 + $0xa8] sm:$0xff]  ;;  %612 = vmatprep.subr.bf16.mxu0 %v611_v16  ;;  %v625_v39 = vpack.c.bf16 %v361_v36, %v360_v35  ;;  %v363_v42 = vld [vmem:[#allocation8 + $0x58] sm:$0xff]  ;;  %v364_v60 = vld [vmem:[#allocation8 + $0x60] sm:$0xff] }
  0x6f   :  { %v615_v22 = vpack.c.bf16 %v373_v20, %v372_v19  ;;  %v629_v45 = vpack.c.bf16 %v363_v42, %v362_v41  ;;  %v382_v63 = vld [vmem:[#allocation8 + $0xf0] sm:$0xff]  ;;  %v383_v0 = vld [vmem:[#allocation8 + $0xf8] sm:$0xff]  ;;  %v267_v5 = vld [vmem:[%s900_s4] sm:$0x3]  ;;  %s778_s4 = smov [#allocation10]  }
  0x70   :  { %v366_v2 = vld [vmem:[#allocation8 + $0x70] sm:$0xff]  ;;  %v367_v3 = vld [vmem:[#allocation8 + $0x78] sm:$0xff]  ;;  %v483_v15 = vld [vmem:[%s902_s6] ss:$0 sm:$0xff]  ;;  %s469_s30 = sshll.u32 %s778_s4, 4  ;;  %s470_s30 = int_to_ptr.vmem [resolvable:$true] %s469_s30 }
  0x71   :  { %574 = vmatpush1.bf16.msra.mxu1 %v573_v25  ;;  %v374_v25 = vld [vmem:[#allocation8 + $0xb0] sm:$0xff]  ;;  %614 = vmatpush3.bf16.msra.mxu0 %v613_v21  ;;  %s739_s8 = scalar_lea.vmem %s470_s30, 128  ;;  %p744_p5 = scmp.lt.s32.totalorder %s470_s30, %s470_s30 }
  0x72   :  { %576 = vmatprep.subr.bf16.mxu1 %v575_v26  ;;  %v375_v26 = vld [vmem:[#allocation8 + $0xb8] sm:$0xff]  ;;  %616 = vmatprep.subr.bf16.mxu0 %v615_v22  ;;  %p740_p4 = scmp.ne.s32.totalorder %s470_s30, %s739_s8  ;;  %p745_p6 = scmp.lt.s32.totalorder %s739_s8, %s739_s8 }
  0x73   :  { %v619_v28 = vpack.c.bf16 %v375_v26, %v374_v25 }
  0x74   :  { %p746_p7 = por %p745_p6, %p744_p5 }
  0x75   :  { %578 = vmatpush1.bf16.msra.mxu1 %v577_v31  ;;  %v376_v31 = vld [vmem:[#allocation8 + $0xc0] sm:$0xff]  ;;  %618 = vmatpush3.bf16.msra.mxu0 %v617_v27 }
  0x76   :  { %580 = vmatprep.subr.bf16.mxu1 %v579_v32  ;;  %v377_v32 = vld [vmem:[#allocation8 + $0xc8] sm:$0xff]  ;;  %620 = vmatprep.subr.bf16.mxu0 %v619_v28  ;;  %p747_p8 = pnand %p746_p7, %p740_p4 }
  0x77   :  { %v623_v34 = vpack.c.bf16 %v377_v32, %v376_v31 }
  0x79   :  { %582 = vmatpush1.bf16.msra.mxu1 %v581_v37  ;;  %v378_v37 = vld [vmem:[#allocation8 + $0xd0] sm:$0xff]  ;;  %622 = vmatpush3.bf16.msra.mxu0 %v621_v33 }
  0x7a   :  { %584 = vmatprep.subr.bf16.mxu1 %v583_v38  ;;  %v379_v38 = vld [vmem:[#allocation8 + $0xd8] sm:$0xff]  ;;  %624 = vmatprep.subr.bf16.mxu0 %v623_v34 }
  0x7b   :  { %v627_v40 = vpack.c.bf16 %v379_v38, %v378_v37 }
  0x7d   :  { %586 = vmatpush1.bf16.msra.mxu1 %v585_v43  ;;  %v380_v43 = vld [vmem:[#allocation8 + $0xe0] sm:$0xff]  ;;  %626 = vmatpush3.bf16.msra.mxu0 %v625_v39 }
  0x7e   :  { %588 = vmatprep.subr.bf16.mxu1 %v587_v44  ;;  %v381_v44 = vld [vmem:[#allocation8 + $0xe8] sm:$0xff]  ;;  %628 = vmatprep.subr.bf16.mxu0 %v627_v40 }
  0x7f   :  { %v631_v46 = vpack.c.bf16 %v381_v44, %v380_v43 }
  0x81   :  { %590 = vmatpush1.bf16.msra.mxu1 %v589_v49  ;;  %630 = vmatpush3.bf16.msra.mxu0 %v629_v45  ;;  %v111_v49 = vsub.s32 0, %v110_v48 }
  0x82   :  { %592 = vmatprep.subr.bf16.mxu1 %v591_v50  ;;  %632 = vmatprep.subr.bf16.mxu0 %v631_v46  ;;  %v107_v50 = vld [vmem:[%s898_s2] sm:$0x3] }
  0x83   :  { %v112_v52 = vrot.slane %v107_v50, %v111_v49  ;;  %v116_v53 = vrot.slane %v107_v50, %v115_v51  ;;  %v272_v6 = vrot.slane %v267_v5, %v111_v49 }
  0x85   :  { %594 = vmatpush1.bf16.msra.mxu1 %v593_v55 }
  0x86   :  { %596 = vmatprep.subr.bf16.mxu1 %v595_v56 }
  0x89   :  { %598 = vmatpush1.bf16.msra.mxu1 %v597_v61  ;;  %v365_v61 = vld [vmem:[#allocation8 + $0x68] sm:$0xff] }
  0x8a   :  { %600 = vmatprep.subr.bf16.mxu1 %v599_v62  ;;  %v633_v62 = vpack.c.bf16 %v365_v61, %v364_v60 }
  0x8c   :  { %634 = vmatpush3.bf16.msra.mxu0 %v633_v62 }
  0x8d   :  { %602 = vmatpush1.bf16.msra.mxu1 %v601_v1  ;;  %v635_v1 = vpack.c.bf16 %v383_v0, %v382_v63 }
  0x8e   :  { %604 = vmatprep.subr.bf16.mxu1 %v603_v4  ;;  %v637_v4 = vpack.c.bf16 %v367_v3, %v366_v2 }
  0x8f   :  { %636 = vmatprep.subr.bf16.mxu0 %v635_v1 }
  0x90   :  { %638 = vmatpush3.bf16.msra.mxu0 %v637_v4 }
  0x91   :  { %606 = vmatpush1.bf16.msra.mxu1 %v605_v7  ;;  %v276_v7 = vrot.slane %v267_v5, %v115_v51 }
 0x13a   :  { %v196_v54 = vpop.f32.mrb[0].mxu0 }
 0x13b   :  { %v197_v55 = vadd.f32 %v196_v54, %v112_v52  ;;  %v198_v56 = vpop.f32.mrb[1].mxu0 }
 0x13c   :  { %v199_v57 = vadd.f32 %v198_v56, %v116_v53 }
 0x13d   :  { %v201_v59 = vmax.f32 %v197_v55, 0.0 }
 0x13e   :  { %v202_v58 = vmax.f32 %v199_v57, 0.0 }
 0x140   :  { %343 = vmatprep.mubr.f32.mxu1 %v202_v58 }
 0x141   :  { %344 = vmatmul.mubr.f32.vlgmr.msra.gmra.mrb[0].mxu1 %v201_v59 }
 0x214   :  { %v345_v8 = vpop.f32.mrb[0].mxu1 }
 0x215   :  { %v346_v9 = vadd.f32 %v345_v8, %v272_v6  ;;  %v347_v10 = vpop.f32.mrb[1].mxu1 }
 0x216   :  { %v348_v11 = vadd.f32 %v347_v10, %v276_v7 }
 0x217   :  { %v350_v13 = vmax.f32 %v346_v9, 0.0 }
 0x218   :  { %v351_v12 = vmax.f32 %v348_v11, 0.0 }
 0x21a   :  { %455 = vmatprep.mubr.f32.mxu0 %v351_v12 }
 0x21b   :  { %456 = vmatmul.mubr.f32.vlgmr.msra.gmra.mrb[2].mxu0 %v350_v13 }
 0x2ee   :  { %v516_v14 = vpop.f32.mrb[2].mxu0 }
 0x2ef   :  { %v517_v16 = vpop.f32.mrb[3].mxu0 }
 0x2f0   :  { %v518_v17 = vadd.f32 %v517_v16, %v516_v14 }
 0x2f2   :  { %v458_v18 = vadd.f32 %v518_v17, %v483_v15 }
 0x2f4   :  { %649 = vtanh.f32 %v458_v18 }
 0x2fe   :  { %v650_v19 = vpop.eup %649 }
 0x2ff   :  { %462 = vst [vmem:[#allocation10] sm:$0xff] %v650_v19 }
 0x300   :  { %750 = shalt.err (!%p747_p8)
}
 0x301   :  { %s751_s6 = scalar_lea.hbm %s903_s7, 128 }
 0x302   :  { %p752_p9 = scmp.ne.s32.totalorder %s903_s7, %s751_s6  ;;  %p755_p10 = scmp.lt.u32.totalorder %s751_s6, %s903_s7 }
 0x304   :  { %p757_p11 = pnand %p755_p10, %p752_p9 }
 0x306   :  { %760 = shalt.err (!%p757_p11)
}
 0x307   :  { %472 = dma.vmem_to_hbm [thread:$0]  %s470_s30, 128, %s903_s7, [#allocation4]  }
 0x308   :  { %767 = dma.done.wait [#allocation4], 128  }
 0x309   :  { %768 = vsyncadd [#allocation4], 4294967168 }
 0x30a   :  { %476 = vsyncpa [#allocation3], 1 }
 0x30b   :  { %477 = vsyncpa [#allocation6], 1 }
 0x30c   :  { %478 = vsyncpa [#allocation9], 1 }
 0x30d   :  { %479 = vsyncpa [#allocation4], 1 }

</bundles_post_ra>
